<compile_context>
chip_gen: v5e
topology: v5e:2x2
jax: 0.10.0
libtpu: 0.0.40
codegen_flags: <defaults>
</compile_context>

<pallas_src>
import functools

import jax
import jax.numpy as jnp
from jax import lax
from jax.experimental import pallas as pl
from jax.experimental.pallas import tpu as pltpu


def _round_up(x, m):
    return ((x + m - 1) // m) * m


def _ce_online_kernel(logits_ref, labels_ref, loss_ref, m_sc, l_sc, p_sc, *,
                      ignore_index, vocab_size, block_vocab, mask_cols):
    """Grid = (token_blocks [parallel], vocab_blocks [arbitrary]).

    INVARIANT (do not change): the ragged token tail of the last block reads
    unspecified HBM data; any NaN/Inf it injects into m/l is discarded ONLY
    because the finalize uses jnp.where(label != ignore_index, ...).  Never
    replace that select with multiplicative masking.
    """
    j = pl.program_id(1)

    @pl.when(j == 0)
    def _init():
        m_sc[...] = jnp.full_like(m_sc, -jnp.inf)
        l_sc[...] = jnp.zeros_like(l_sc)
        p_sc[...] = jnp.zeros_like(p_sc)

    # Local lane index within this vocab tile; global offsets are folded into
    # the (tn,1)/scalar values we compare against (no per-element i32 add).
    col = lax.broadcasted_iota(jnp.int32, logits_ref.shape, 1)
    if mask_cols:
        # Fallback path only (V not divisible by the tile): valid-lane mask.
        lane_ok = col < (vocab_size - j * block_vocab)

    # ---- pass 1: running max, directly on the low-precision data ----------
    blk = logits_ref[...]
    if mask_cols:
        blk = jnp.where(lane_ok, blk, jnp.array(-jnp.inf, dtype=blk.dtype))
    m_prev = m_sc[...]
    tile_max = jnp.max(blk, axis=-1, keepdims=True).astype(jnp.float32)
    m_new = jnp.maximum(m_prev, tile_max)

    # ---- pass 2: exp / sum; fp32 upcast fused into the exp argument -------
    blk = logits_ref[...]
    if mask_cols:
        blk = jnp.where(lane_ok, blk, jnp.array(-jnp.inf, dtype=blk.dtype))
    e = jnp.exp(blk.astype(jnp.float32) - m_new)               # (tn, tv) f32, short-lived
    l_sc[...] = (l_sc[...] * jnp.exp(m_prev - m_new)
                 + jnp.sum(e, axis=-1, keepdims=True))
    m_sc[...] = m_new

    # ---- pass 3: fused label gather (labels < V, so no tail mask needed) --
    lbl_local = labels_ref[...] - j * block_vocab               # (tn, 1) i32
    blk = logits_ref[...]
    picked = jnp.sum(jnp.where(col == lbl_local, blk,
                               jnp.array(0, dtype=blk.dtype)),
                     axis=-1, keepdims=True)                    # exact in bf16
    p_sc[...] = p_sc[...] + picked.astype(jnp.float32)

    @pl.when(j == pl.num_programs(1) - 1)
    def _finalize():
        valid = labels_ref[...] != ignore_index
        lse = m_sc[...] + jnp.log(l_sc[...])
        loss_ref[...] = jnp.where(valid, lse - p_sc[...], 0.0)


def _pick_vocab_tile(V, block_vocab):
    """Largest lane-aligned vocab tile; prefer one that divides V exactly so the
    in-kernel tail mask (extra VALU work on EVERY block) is never paid."""
    if V <= block_vocab or V <= 128:
        return V, False                       # single full-dim block
    bv = max((block_vocab // 128) * 128, 128)
    for tv in range(bv, 0, -128):
        if V % tv == 0:
            return tv, False                  # exact tiling, no mask
    return bv, True                           # fallback: mask ragged last block


def _vmem_budget_bytes():
    """Per-generation scoped-VMEM budget (v5e/v6e: 128 MiB physical, v7x: 64 MiB),
    leaving headroom for compiler scratch."""
    try:
        phys = int(pltpu.get_tpu_info().vmem_capacity_bytes)
    except Exception:
        phys = 64 * 1024 * 1024
    return min(int(phys * 0.7), 96 * 1024 * 1024)


def chunked_ce_loss(logits, labels, *, chunk_size=200, ignore_index=-100,
                    reduction="mean", block_tokens=256, block_vocab=4096):
    """JAX/Pallas equivalent of CEWithChunkedOutputLoss.forward.

    `chunk_size` is accepted for interface parity with the PyTorch module, but
    the result is chunk-independent; the kernel picks its own TPU-friendly
    (block_tokens x block_vocab) tiles.
    """
    del chunk_size
    N, V = logits.shape

    tv, mask_cols = _pick_vocab_tile(V, block_vocab)
    v_blocks = pl.cdiv(V, tv)

    budget = _vmem_budget_bytes()
    itemsize = jnp.dtype(logits.dtype).itemsize

    # Token tile: sublane-aligned, capped by token count and the VMEM budget
    # (double-buffered input tile + one fp32 exp tile + fp32 slack per step).
    tn = min(_round_up(block_tokens, 8), _round_up(N, 8))
    while tn > 8 and tn * tv * (2 * itemsize + 8) > budget:
        tn = max(8, _round_up(tn // 2, 8))

    n_blocks = pl.cdiv(N, tn)
    if n_blocks == 1 and N > 8:
        # v7x megacore: make sure both TensorCores get a token block.
        tn = _round_up((N + 1) // 2, 8)
        n_blocks = pl.cdiv(N, tn)
    n_pad = n_blocks * tn

    # Only the tiny label vector is padded (with ignore_index) so ragged tail
    # rows of the (unpadded) logits produce exactly-zero loss.
    labels_p = jnp.pad(labels.astype(jnp.int32), (0, n_pad - N),
                       constant_values=ignore_index).reshape(n_pad, 1)

    kernel = functools.partial(
        _ce_online_kernel, ignore_index=ignore_index, vocab_size=V,
        block_vocab=tv, mask_cols=mask_cols)

    per_tok = pl.pallas_call(
        kernel,
        out_shape=jax.ShapeDtypeStruct((n_pad, 1), jnp.float32),
        grid_spec=pltpu.PrefetchScalarGridSpec(
            num_scalar_prefetch=0,
            grid=(n_blocks, v_blocks),
            in_specs=[
                # TODO(synk): on v6e, consider pipeline_mode=pl.Buffered(3) here
                # if xprof shows exposed DMA waits after the VALU trim.
                pl.BlockSpec((tn, tv), lambda i, j: (i, j)),   # logits tile
                # labels: (i, 0) for every j -> stays VMEM-resident across j.
                pl.BlockSpec((tn, 1), lambda i, j: (i, 0)),
            ],
            # loss: (i, 0) for every j -> written back once per token block.
            out_specs=pl.BlockSpec((tn, 1), lambda i, j: (i, 0)),
            scratch_shapes=[
                pltpu.VMEM((tn, 1), jnp.float32),   # running max m
                pltpu.VMEM((tn, 1), jnp.float32),   # running sum l
                pltpu.VMEM((tn, 1), jnp.float32),   # gathered label logit
            ],
        ),
        compiler_params=pltpu.CompilerParams(
            dimension_semantics=("parallel", "arbitrary"),
            vmem_limit_bytes=budget,
        ),
    )(logits, labels_p)

    per_tok = per_tok[:N, 0]
    if reduction == "none":
        return per_tok
    total = jnp.sum(per_tok)
    if reduction == "sum":
        return total
    if reduction == "mean":
        cnt = jnp.sum(labels != ignore_index).astype(jnp.float32)
        return total / cnt
    raise ValueError(f"Invalid reduction mode: {reduction}")


def _reference_loss(logits, labels, ignore_index=-100, reduction="mean"):
    lg = logits.astype(jnp.float32)
    lse = jax.nn.logsumexp(lg, axis=-1)
    safe_lbl = jnp.where(labels == ignore_index, 0, labels)
    picked = jnp.take_along_axis(lg, safe_lbl[:, None], axis=-1)[:, 0]
    valid = labels != ignore_index
    per_tok = jnp.where(valid, lse - picked, 0.0)
    if reduction == "mean":
        return per_tok.sum() / valid.sum()
    if reduction == "sum":
        return per_tok.sum()
    return per_tok


if __name__ == "__main__":
    key = jax.random.PRNGKey(0)
    k1, k2, k3, k4 = jax.random.split(key, 4)
    ignore_index = -100

    # Case 1: ragged token tail + ragged vocab tail (in-kernel mask fallback).
    N, V = 37, 200
    logits = jax.random.normal(k1, (N, V), dtype=jnp.float32).astype(jnp.bfloat16)
    labels = jax.random.randint(k2, (N,), 0, V, dtype=jnp.int32)
    labels = labels.at[0].set(ignore_index).at[7].set(ignore_index).at[N - 1].set(ignore_index)

    run = functools.partial(chunked_ce_loss, ignore_index=ignore_index,
                            block_tokens=16, block_vocab=128)

    ref = _reference_loss(logits, labels, ignore_index=ignore_index, reduction="mean")
    loss = jax.block_until_ready(run(logits, labels, reduction="mean"))
    assert jnp.allclose(loss, ref, atol=1e-3, rtol=1e-3), (loss, ref)

    s = jax.block_until_ready(run(logits, labels, reduction="sum"))
    assert jnp.allclose(s, _reference_loss(logits, labels, ignore_index, "sum"),
                        atol=1e-2, rtol=1e-3), s

    n = jax.block_until_ready(run(logits, labels, reduction="none"))
    assert n.shape == (N,)
    assert jnp.allclose(n, _reference_loss(logits, labels, ignore_index, "none"),
                        atol=1e-3, rtol=1e-3)

    # Case 2: default config -> full-V tile (single vocab block, V not /128).
    loss2 = jax.block_until_ready(
        chunked_ce_loss(logits, labels, ignore_index=ignore_index, reduction="mean"))
    assert jnp.allclose(loss2, ref, atol=1e-3, rtol=1e-3), (loss2, ref)

    # Case 3: vocab tile divides V exactly (no in-kernel tail mask), multiple
    # vocab blocks exercising the online LSE across tiles.
    N2, V2 = 40, 256
    logits2 = jax.random.normal(k3, (N2, V2), dtype=jnp.float32).astype(jnp.bfloat16)
    labels2 = jax.random.randint(k4, (N2,), 0, V2, dtype=jnp.int32)
    labels2 = labels2.at[3].set(ignore_index)
    out3 = jax.block_until_ready(
        chunked_ce_loss(logits2, labels2, ignore_index=ignore_index,
                        reduction="mean", block_tokens=16, block_vocab=128))
    ref3 = _reference_loss(logits2, labels2, ignore_index=ignore_index, reduction="mean")
    assert jnp.allclose(out3, ref3, atol=1e-3, rtol=1e-3), (out3, ref3)

    print("KERNEL_OK")
</pallas_src>

<mosaic_0001>
module attributes {stable_mosaic.version = 11 : i64} {
  func.func @_ce_online_kernel(%arg0: i32, %arg1: i32, %arg2: memref<16x128xbf16, #tpu.memory_space<vmem>>, %arg3: memref<16x1xi32, #tpu.memory_space<vmem>>, %arg4: memref<16x1xf32, #tpu.memory_space<vmem>>, %arg5: memref<16x1xf32, #tpu.memory_space<vmem>>, %arg6: memref<16x1xf32, #tpu.memory_space<vmem>>, %arg7: memref<16x1xf32, #tpu.memory_space<vmem>>) attributes {dimension_semantics = [#tpu.dimension_semantics<parallel>, #tpu.dimension_semantics<arbitrary>], iteration_bounds = array<i64: 3, 2>, scalar_prefetch = 0 : i64, scratch_operands = 3 : i64, tpu.core_type = #tpu.core_type<tc>, window_params = [{transform_indices = @transform_0, window_bounds = array<i64: 16, 128>}, {transform_indices = @transform_1, window_bounds = array<i64: 16, 1>}, {transform_indices = @transform_2, window_bounds = array<i64: 16, 1>}]} {
    %c0_i32 = arith.constant 0 : i32
    %0 = arith.cmpi eq, %arg1, %c0_i32 : i32
    %1 = arith.extui %0 : i1 to i32
    %c0_i32_0 = arith.constant 0 : i32
    %2 = arith.cmpi ne, %1, %c0_i32_0 : i32
    scf.if %2 {
      %cst_27 = arith.constant 0xFF800000 : f32
      %52 = vector.broadcast %cst_27 : f32 to vector<16x1xf32>
      %c0_28 = arith.constant 0 : index
      %c0_29 = arith.constant 0 : index
      %53 = vector.load %arg5[%c0_28, %c0_29] : memref<16x1xf32, #tpu.memory_space<vmem>>, vector<16x1xf32>
      tpu.vector_store %arg5[%c0_28, %c0_29], %52 {strides = array<i32>} : memref<16x1xf32, #tpu.memory_space<vmem>>, vector<16x1xf32>,
      %cst_30 = arith.constant 0.000000e+00 : f32
      %54 = vector.broadcast %cst_30 : f32 to vector<16x1xf32>
      %c0_31 = arith.constant 0 : index
      %c0_32 = arith.constant 0 : index
      %55 = vector.load %arg6[%c0_31, %c0_32] : memref<16x1xf32, #tpu.memory_space<vmem>>, vector<16x1xf32>
      tpu.vector_store %arg6[%c0_31, %c0_32], %54 {strides = array<i32>} : memref<16x1xf32, #tpu.memory_space<vmem>>, vector<16x1xf32>,
      %cst_33 = arith.constant 0.000000e+00 : f32
      %56 = vector.broadcast %cst_33 : f32 to vector<16x1xf32>
      %c0_34 = arith.constant 0 : index
      %c0_35 = arith.constant 0 : index
      %57 = vector.load %arg7[%c0_34, %c0_35] : memref<16x1xf32, #tpu.memory_space<vmem>>, vector<16x1xf32>
      tpu.vector_store %arg7[%c0_34, %c0_35], %56 {strides = array<i32>} : memref<16x1xf32, #tpu.memory_space<vmem>>, vector<16x1xf32>,
    } else {
    }
    %3 = tpu.iota {dimensions = array<i32: 1>} : vector<16x128xi32>
    %c128_i32 = arith.constant 128 : i32
    %4 = arith.muli %arg1, %c128_i32 : i32
    %c200_i32 = arith.constant 200 : i32
    %5 = arith.subi %c200_i32, %4 : i32
    %6 = vector.broadcast %5 : i32 to vector<16x128xi32>
    %7 = arith.cmpi slt, %3, %6 : vector<16x128xi32>
    %c0 = arith.constant 0 : index
    %c0_1 = arith.constant 0 : index
    %8 = vector.load %arg2[%c0, %c0_1] : memref<16x128xbf16, #tpu.memory_space<vmem>>, vector<16x128xbf16>
    %cst = arith.constant 0xFF80 : bf16
    %9 = vector.broadcast %cst : bf16 to vector<16x128xbf16>
    %10 = arith.select %7, %8, %9 : vector<16x128xi1>, vector<16x128xbf16>
    %c0_2 = arith.constant 0 : index
    %c0_3 = arith.constant 0 : index
    %11 = vector.load %arg5[%c0_2, %c0_3] : memref<16x1xf32, #tpu.memory_space<vmem>>, vector<16x1xf32>
    %cst_4 = arith.constant dense<0xFF80> : vector<16xbf16>
    %12 = vector.multi_reduction <maximumf>, %10, %cst_4 [1] : vector<16x128xbf16> to vector<16xbf16>
    %13 = vector.shape_cast %12 : vector<16xbf16> to vector<16x1xbf16>
    %14 = arith.extf %13 : vector<16x1xbf16> to vector<16x1xf32>
    %15 = arith.maximumf %11, %14 : vector<16x1xf32>
    %c0_5 = arith.constant 0 : index
    %c0_6 = arith.constant 0 : index
    %16 = vector.load %arg2[%c0_5, %c0_6] : memref<16x128xbf16, #tpu.memory_space<vmem>>, vector<16x128xbf16>
    %cst_7 = arith.constant 0xFF80 : bf16
    %17 = vector.broadcast %cst_7 : bf16 to vector<16x128xbf16>
    %18 = arith.select %7, %16, %17 : vector<16x128xi1>, vector<16x128xbf16>
    %19 = arith.extf %18 : vector<16x128xbf16> to vector<16x128xf32>
    %20 = vector.broadcast %15 : vector<16x1xf32> to vector<16x128xf32>
    %21 = arith.subf %19, %20 : vector<16x128xf32>
    %22 = math.exp %21 : vector<16x128xf32>
    %c0_8 = arith.constant 0 : index
    %c0_9 = arith.constant 0 : index
    %23 = vector.load %arg6[%c0_8, %c0_9] : memref<16x1xf32, #tpu.memory_space<vmem>>, vector<16x1xf32>
    %24 = arith.subf %11, %15 : vector<16x1xf32>
    %25 = math.exp %24 : vector<16x1xf32>
    %26 = arith.mulf %23, %25 : vector<16x1xf32>
    %cst_10 = arith.constant dense<0.000000e+00> : vector<16xf32>
    %27 = vector.multi_reduction <add>, %22, %cst_10 [1] : vector<16x128xf32> to vector<16xf32>
    %28 = vector.shape_cast %27 : vector<16xf32> to vector<16x1xf32>
    %29 = arith.addf %26, %28 : vector<16x1xf32>
    %c0_11 = arith.constant 0 : index
    %c0_12 = arith.constant 0 : index
    %30 = vector.load %arg6[%c0_11, %c0_12] : memref<16x1xf32, #tpu.memory_space<vmem>>, vector<16x1xf32>
    tpu.vector_store %arg6[%c0_11, %c0_12], %29 {strides = array<i32>} : memref<16x1xf32, #tpu.memory_space<vmem>>, vector<16x1xf32>,
    %c0_13 = arith.constant 0 : index
    %c0_14 = arith.constant 0 : index
    %31 = vector.load %arg5[%c0_13, %c0_14] : memref<16x1xf32, #tpu.memory_space<vmem>>, vector<16x1xf32>
    tpu.vector_store %arg5[%c0_13, %c0_14], %15 {strides = array<i32>} : memref<16x1xf32, #tpu.memory_space<vmem>>, vector<16x1xf32>,
    %c0_15 = arith.constant 0 : index
    %c0_16 = arith.constant 0 : index
    %32 = vector.load %arg3[%c0_15, %c0_16] : memref<16x1xi32, #tpu.memory_space<vmem>>, vector<16x1xi32>
    %c128_i32_17 = arith.constant 128 : i32
    %33 = arith.muli %arg1, %c128_i32_17 : i32
    %34 = vector.broadcast %33 : i32 to vector<16x1xi32>
    %35 = arith.subi %32, %34 : vector<16x1xi32>
    %c0_18 = arith.constant 0 : index
    %c0_19 = arith.constant 0 : index
    %36 = vector.load %arg2[%c0_18, %c0_19] : memref<16x128xbf16, #tpu.memory_space<vmem>>, vector<16x128xbf16>
    %37 = vector.broadcast %35 : vector<16x1xi32> to vector<16x128xi32>
    %38 = arith.cmpi eq, %3, %37 : vector<16x128xi32>
    %cst_20 = arith.constant 0.000000e+00 : bf16
    %39 = vector.broadcast %cst_20 : bf16 to vector<16x128xbf16>
    %40 = arith.select %38, %36, %39 : vector<16x128xi1>, vector<16x128xbf16>
    %41 = arith.extf %40 : vector<16x128xbf16> to vector<16x128xf32>
    %cst_21 = arith.constant dense<0.000000e+00> : vector<16xf32>
    %42 = vector.multi_reduction <add>, %41, %cst_21 [1] : vector<16x128xf32> to vector<16xf32>
    %43 = vector.shape_cast %42 : vector<16xf32> to vector<16x1xf32>
    %44 = arith.truncf %43 : vector<16x1xf32> to vector<16x1xbf16>
    %c0_22 = arith.constant 0 : index
    %c0_23 = arith.constant 0 : index
    %45 = vector.load %arg7[%c0_22, %c0_23] : memref<16x1xf32, #tpu.memory_space<vmem>>, vector<16x1xf32>
    %46 = arith.extf %44 : vector<16x1xbf16> to vector<16x1xf32>
    %47 = arith.addf %45, %46 : vector<16x1xf32>
    %c0_24 = arith.constant 0 : index
    %c0_25 = arith.constant 0 : index
    %48 = vector.load %arg7[%c0_24, %c0_25] : memref<16x1xf32, #tpu.memory_space<vmem>>, vector<16x1xf32>
    tpu.vector_store %arg7[%c0_24, %c0_25], %47 {strides = array<i32>} : memref<16x1xf32, #tpu.memory_space<vmem>>, vector<16x1xf32>,
    %c1_i32 = arith.constant 1 : i32
    %49 = arith.cmpi eq, %arg1, %c1_i32 : i32
    %50 = arith.extui %49 : i1 to i32
    %c0_i32_26 = arith.constant 0 : i32
    %51 = arith.cmpi ne, %50, %c0_i32_26 : i32
    scf.if %51 {
      %c0_27 = arith.constant 0 : index
      %c0_28 = arith.constant 0 : index
      %52 = vector.load %arg3[%c0_27, %c0_28] : memref<16x1xi32, #tpu.memory_space<vmem>>, vector<16x1xi32>
      %c-100_i32 = arith.constant -100 : i32
      %53 = vector.broadcast %c-100_i32 : i32 to vector<16x1xi32>
      %54 = arith.cmpi ne, %52, %53 : vector<16x1xi32>
      %c0_29 = arith.constant 0 : index
      %c0_30 = arith.constant 0 : index
      %55 = vector.load %arg5[%c0_29, %c0_30] : memref<16x1xf32, #tpu.memory_space<vmem>>, vector<16x1xf32>
      %c0_31 = arith.constant 0 : index
      %c0_32 = arith.constant 0 : index
      %56 = vector.load %arg6[%c0_31, %c0_32] : memref<16x1xf32, #tpu.memory_space<vmem>>, vector<16x1xf32>
      %57 = math.log %56 : vector<16x1xf32>
      %58 = arith.addf %55, %57 : vector<16x1xf32>
      %c0_33 = arith.constant 0 : index
      %c0_34 = arith.constant 0 : index
      %59 = vector.load %arg7[%c0_33, %c0_34] : memref<16x1xf32, #tpu.memory_space<vmem>>, vector<16x1xf32>
      %60 = arith.subf %58, %59 : vector<16x1xf32>
      %cst_35 = arith.constant 0.000000e+00 : f32
      %61 = vector.broadcast %cst_35 : f32 to vector<16x1xf32>
      %62 = arith.select %54, %60, %61 : vector<16x1xi1>, vector<16x1xf32>
      %c0_36 = arith.constant 0 : index
      %c0_37 = arith.constant 0 : index
      %63 = vector.load %arg4[%c0_36, %c0_37] : memref<16x1xf32, #tpu.memory_space<vmem>>, vector<16x1xf32>
      tpu.vector_store %arg4[%c0_36, %c0_37], %62 {strides = array<i32>} : memref<16x1xf32, #tpu.memory_space<vmem>>, vector<16x1xf32>,
    } else {
    }
    return
  }
  func.func @transform_0(%arg0: i32, %arg1: i32) -> (i32, i32) {
    %c0_i32 = arith.constant 0 : i32
    return %arg0, %arg1 : i32, i32
  }
  func.func @transform_1(%arg0: i32, %arg1: i32) -> (i32, i32) {
    %c0_i32 = arith.constant 0 : i32
    %c0_i32_0 = arith.constant 0 : i32
    return %arg0, %c0_i32 : i32, i32
  }
  func.func @transform_2(%arg0: i32, %arg1: i32) -> (i32, i32) {
    %c0_i32 = arith.constant 0 : i32
    %c0_i32_0 = arith.constant 0 : i32
    return %arg0, %c0_i32 : i32, i32
  }
}

</mosaic_0001>

<bundles_post_ra>
// kernel: tpu_custom_call.1
= control target key start
LH: loop header
LB: loop body
LE: loop exit
PB: predicated region body
PF: predicated region fallthrough
CT: control target
= control target key end

     0   :  { %s884_s9 = smov 0   ;;  %s886_s10 = smov 0   ;;  %s1034_s0 = inlined_call_operand.vmem [shape: bf16[37,200], index: 0, kind: input, shape index: {}]   ;;  %s1035_s1 = inlined_call_operand.vmem [shape: s32[48,1], index: 1, kind: input, shape index: {}]   ;;  %s1036_s2 = inlined_call_operand.vmem [shape: f32[48,1], index: 2, kind: output, shape index: {}]  }
   0x1   :  { %s888_s11 = smov 0   ;;  %s890_s12 = smov 0  }
   0x2   :  { %s892_s13 = smov 0   ;;  %s894_s14 = smov 0  }
   0x3   :  { %s896_s15 = smov 0  }
   0x4 LB: > { %s21_s16 = sadd.s32 1, %s824_s13  ;;  %s24_s17 = sadd.s32 1, %s828_s14  ;;  %s832_s15 = sphi %s896_s15, %s12_s15   ;;  %s828_s14 = sphi %s894_s14, %s1042_s14   ;;  %s824_s13 = sphi %s892_s13, %s1041_s13   ;;  %s820_s12 = sphi %s890_s12, %s1040_s12   ;;  %s816_s11 = sphi %s888_s11, %s1039_s11   ;;  %s812_s10 = sphi %s886_s10, %s1038_s10   ;;  %s808_s9 = sphi %s884_s9, %s1037_s9  }
   0x5   : > { %p22_p0 = scmp.ge.s32.totalorder %s21_s16, 2  ;;  %p40_p1 = scmp.ne.s32.totalorder %s812_s10, %s808_s9 }
   0x6   : > { %p41_p2 = scmp.eq.s32.totalorder %s832_s15, 0  ;;  %s33_s21 = sadd.s32 1, %s812_s10 }
   0x7   : > { %s1044_s16 = smov (%p22_p0, %s21_s16), 0  ;;  %s1046_s17 = smov (!%p22_p0, %s24_s17), %s828_s14 }
   0x8   : > { %p42_p3 = por %p41_p2, %p40_p1  ;;  %p26_p4 = scmp.ge.s32.totalorder %s1046_s17, 3 }
   0x9   : > { %s29_s18 = ssub.s32 %s824_s13, %s1044_s16  ;;  %p577_p6 = scmp.ge.s32.totalorder %s832_s15, 6 }
   0xa   : > { %s1048_s17 = smov (%p26_p4, %s1046_s17), 0 }
   0xb   : > { %s28_s19 = ssub.s32 %s828_s14, %s1048_s17  ;;  %118 = sbr.rel (%p577_p6) target bundleno = 60 (0x3c), region = 16 }
   0xc   : > { %s30_s20 = sor.u32 %s29_s18, %s28_s19 }
   0xd   : > { %p31_p5 = scmp.eq.s32.totalorder %s30_s20, 0 }
   0xf   : > { %s935_s22 = scalar_select %p31_p5, %s812_s10, %s33_s21  }
  0x10   : > { %121 = sbr.rel (!%p42_p3) target bundleno = 60 (0x3c), region = 20  ;;  %s123_s23 = sand.u32 (%p42_p3), 1, %s812_s10  }
  0x11   : > { %s579_s24 = sshll.u32 (%p42_p3), %s828_s14, 1  ;;  %s578_s25 = sshll.u32 (%p42_p3), %s123_s23, 3 }
  0x12   : > { %s127_s26 = ssub.s32 (%p42_p3), 5, %s579_s24  ;;  %s605_s27 = sshll.u32 (%p42_p3), %s828_s14, 2 }
  0x13   : > { %p128_p7 = scmp.lt.s32.totalorder (%p42_p3), %s127_s26, 2  ;;  %s133_s28 = sadd.s32 (%p42_p3), %s824_s13, %s605_s27 }
  0x14   : > { %s583_s30 = sshll.u32 (%p42_p3), %s133_s28, 2  ;;  %s950_s6 = scalar_lea.vmem (%p42_p3), [#allocation5], %s578_s25  }
  0x15   : > { %s1050_s26 = smov (!%p128_p7, %s127_s26), 2  ;;  %s948_s5 = scalar_lea.vmem %s1034_s0, %s583_s30  }
  0x16   : > { %s580_s29 = sshll.u32 %s1050_s26, 2 }
  0x17   : > { %p584_p8 = scmp.eq.s32.totalorder %s580_s29, 0 }
  0x18   : > { %s953_s7 = sshrl.u32 (!%p584_p8), %s1050_s26, 1 }
  0x19   : > { %138 = sbr.rel (%p584_p8) target bundleno = 60 (0x3c), region = 24  ;;  %p585_p9 = scmp.le.s32.totalorder (!%p584_p8), %s953_s7, 0 }
  0x1e   : > { %513 = sbr.rel (%p585_p9) target bundleno = 43 (0x2b), region = 124  ;;  %s834_s8 = smov (!%p585_p9), %s950_s6  }
  0x1f   : > { %s838_s18 = smov (!%p585_p9), %s948_s5   ;;  %s842_s19 = smov (!%p585_p9), 0  }
  0x20   : > { %s846_s20 = smov (!%p585_p9), 0  }
  0x23 LB: >> { %v155_v0 = vld [vmem:[%s840_s18] sm:$0xf]  ;;  %v157_v1 = vld [vmem:[%s840_s18 + $0x8] sm:$0xf]  ;;  %s159_s21 = sadd.s32 1, %s844_s19  ;;  %s149_s20 = sadd.s32 1, %s848_s20   ;;  %s848_s20 = sphi %s846_s20, %s149_s20   ;;  %s844_s19 = sphi %s842_s19, %s843_s19   ;;  %s840_s18 = sphi %s838_s18, %s164_s18   ;;  %s836_s8 = sphi %s834_s8, %s165_s8  }
  0x24   : >> { %156 = vst [vmem:[%s836_s8] sm:$0xf] %v155_v0  ;;  %p160_p10 = scmp.ge.s32.totalorder %s159_s21, %s953_s7  ;;  %p148_p11 = scmp.ge.s32.totalorder %s149_s20, %s953_s7 }
  0x25   : >> { %158 = vst [vmem:[%s836_s8 + $0x4] sm:$0xf] %v157_v1 }
  0x26   : >> { %s1052_s21 = smov (%p160_p10, %s159_s21), 0  ;;  %151 = sbr.rel (!%p148_p11) target bundleno = 35 (0x23), region = 130 }
  0x27   : >> { %s586_s23 = sshll.u32 %s1052_s21, 4  ;;  %s587_s24 = sshll.u32 %s1052_s21, 3 }
  0x28   : >> { %s164_s18 = scalar_lea.vmem %s948_s5, %s586_s23   ;;  %s165_s8 = scalar_lea.vmem %s950_s6, %s587_s24 [#allocation5]  }
  0x29   : >> { %s843_s19 = smov %s1052_s21  }
  0x2b PF: > { %s963_s25 = sand.u32 1, %s1050_s26   ;;  %s606_s27 = sshll.u32 %s953_s7, 4 }
  0x2c   : > { %s967_s28 = scalar_lea.vmem %s948_s5, %s606_s27   ;;  %s607_s29 = sshll.u32 %s953_s7, 3 }
  0x2d   : > { %s172_s30 = scalar_lea.vmem %s950_s6, %s607_s29 [#allocation5]   ;;  %p591_p12 = scmp.le.s32.totalorder %s963_s25, 0 }
  0x2e   : > { %s850_s3 = smov (!%p591_p12), %s172_s30   ;;  %s854_s4 = smov (!%p591_p12), %s967_s28  }
  0x2f   : > { %527 = sbr.rel (%p591_p12) target bundleno = 60 (0x3c), region = 135  ;;  %s858_s8 = smov (!%p591_p12), 0  }
  0x30   : > { %s862_s18 = smov (!%p591_p12), 0  }
  0x34 LB: >> { %v182_v2 = vld [vmem:[%s856_s4] sm:$0xf]  ;;  %s184_s26 = sadd.s32 1, %s860_s8  ;;  %s176_s18 = sadd.s32 1, %s864_s18   ;;  %s864_s18 = sphi %s862_s18, %s176_s18   ;;  %s860_s8 = sphi %s858_s8, %s859_s8   ;;  %s856_s4 = sphi %s854_s4, %s189_s4   ;;  %s852_s3 = sphi %s850_s3, %s190_s3  }
  0x35   : >> { %183 = vst [vmem:[%s852_s3] sm:$0xf] %v182_v2  ;;  %p185_p13 = scmp.ge.s32.totalorder %s184_s26, %s963_s25  ;;  %p175_p0 = scmp.ge.s32.totalorder %s176_s18, %s963_s25 }
  0x37   : >> { %s1054_s26 = smov (%p185_p13, %s184_s26), 0  ;;  %178 = sbr.rel (!%p175_p0) target bundleno = 52 (0x34), region = 141 }
  0x38   : >> { %s592_s5 = sshll.u32 %s1054_s26, 3  ;;  %s593_s6 = sshll.u32 %s1054_s26, 2 }
  0x39   : >> { %s189_s4 = scalar_lea.vmem %s967_s28, %s592_s5   ;;  %s190_s3 = scalar_lea.vmem %s172_s30, %s593_s6 [#allocation5]  }
  0x3a   : >> { %s859_s8 = smov %s1054_s26  }
  0x3c PF: > { %p594_p1 = scmp.ge.s32.totalorder %s832_s15, 1  ;;  %p252_p2 = scmp.lt.s32.totalorder %s832_s15, 7 }
  0x3e   : > { %p253_p3 = pnand %p594_p1, %p252_p2 }
  0x3f   : > { %s259_s7 = sand.u32 (!%p253_p3), 1, %s808_s9   ;;  %s596_s19 = sshll.u32 (!%p253_p3), %s820_s12, 1 }
  0x40   : > { %256 = sbr.rel (%p253_p3) target bundleno = 487 (0x1e7), region = 72  ;;  %s595_s20 = sshll.u32 (!%p253_p3), %s259_s7, 3 }
  0x41   : > { %p291_p4 = scmp.lt.s32.totalorder (!%p253_p3), %s596_s19, 5  ;;  %s990_s30 = scalar_lea.vmem (!%p253_p3), [#allocation5], %s595_s20 }
  0x42   : > { %p600_p5 = scmp.ne.s32.totalorder (!%p253_p3), %s816_s11, 0 }
  0x45   : > { %s1056_s19 = smov (!%p291_p4, %s596_s19), 5  ;;  %307 = sbr.rel (%p600_p5) target bundleno = 81 (0x51), region = 80 }
  0x46   : > { %s597_s21 = sshll.u32 %s1056_s19, 3 }
  0x47   : > { %s983_s25 = scalar_lea.vmem %s1035_s1, %s597_s21  ;;  %s988_s29 = scalar_lea.vmem %s1036_s2, %s597_s21 }
  0x4a   : > { %vm308_vm0 = vcmask 7168   ;;  %v866_v3 = vmov -inf   ;;  %v867_v4 = vmov 0.0  }
  0x4b   : > { %309 = vst.msk [vmem:[#allocation2] sm:$0xff] %vm308_vm0, %v866_v3 }
  0x4c   : > { %310 = vst.msk [vmem:[#allocation2 + $0x8] sm:$0xff] %vm308_vm0, %v866_v3 }
  0x4d   : > { %311 = vst.msk [vmem:[#allocation3] sm:$0xff] %vm308_vm0, %v867_v4 }
  0x4e   : > { %312 = vst.msk [vmem:[#allocation3 + $0x8] sm:$0xff] %vm308_vm0, %v867_v4 }
  0x4f   : > { %313 = vst.msk [vmem:[#allocation4] sm:$0xff] %vm308_vm0, %v867_v4 }
  0x50   : > { %314 = vst.msk [vmem:[#allocation4 + $0x8] sm:$0xff] %vm308_vm0, %v867_v4 }
  0x51 PF: > { %v315_v5 = vlaneseq  ;;  %s601_s9 = sshll.u32 %s816_s11, 7  ;;  %v321_v8 = vld [vmem:[%s990_s30] sm:$0xf]  ;;  %v322_v11 = vld [vmem:[%s990_s30 + $0x4] sm:$0xf]  ;;  %v868_v14 = vmov 0  }
  0x52   : > { %s318_s12 = ssub.s32 200, %s601_s9  ;;  %731 = vset.pattern.permute.xlu1 %v868_v14  ;;  %732 = vset.pattern.permute.xlu2 %v868_v14  ;;  %v377_v15 = vld [vmem:[%s983_s25] sm:$0xff]  ;;  %v379_v16 = vstv %s601_s9  ;;  %v378_v18 = vld [vmem:[%s983_s25 + $0x8] sm:$0xff]  ;;  %vm372_vm3 = vcmask 7168   ;;  %v382_v34 = vld [vmem:[%s990_s30] sm:$0xf] }
  0x53   : > { %v316_v6 = vand.u32 127, %v315_v5  ;;  %v319_v7 = vstv %s318_s12  ;;  %733 = vset.pattern.permute.xlu0 %v868_v14  ;;  %v380_v17 = vsub.s32 %v377_v15, %v379_v16  ;;  %v381_v19 = vsub.s32 %v378_v18, %v379_v16  ;;  %v326_v22 = vld [vmem:[#allocation2] sm:$0xff]  ;;  %v327_v28 = vld [vmem:[#allocation2 + $0x8] sm:$0xff]  ;;  %v383_v35 = vld [vmem:[%s990_s30 + $0x4] sm:$0xf]  ;;  %p602_p6 = scmp.ne.s32.totalorder %s816_s11, 1 }
  0x54   : > { %v356_v61 = vld [vmem:[#allocation3] sm:$0xff] }
  0x55   : > { %vm320_vm1 = vcmp.lt.s32.totalorder %v316_v6, %v319_v7  ;;  %385 = vperm.xlu2 %732, %v380_v17   ;;  %v357_v2 = vld [vmem:[#allocation3 + $0x8] sm:$0xff] }
  0x56   : > { %vm323_vm2 = vmpackc.low %vm320_vm1, %vm320_vm1  ;;  %v404_v53 = vld [vmem:[#allocation4] sm:$0xff] }
  0x57   : > { %v324_v9 = vsel %vm323_vm2, %v321_v8, 4286644096  ;;  %v325_v12 = vsel %vm323_vm2, %v322_v11, 4286644096  ;;  %v405_v52 = vld [vmem:[#allocation4 + $0x8] sm:$0xff] }
  0x58   : > { %v328_v10 = vunpack.c.l.bf16 %v324_v9  ;;  %v329_v13 = vunpack.c.l.bf16 %v325_v12 }
  0x5a   : > { %330 = vmax.xlane.f32.xlu0 %v328_v10 }
  0x5d   : > { %388 = vperm.xlu2 %732, %v381_v19  }
  0x62   : > { %332 = vmax.xlane.f32.xlu0 %v329_v13 }
  0xaf   : > { %v386_v32 = vpop.permute.xlu2 %385 }
  0xb0   : > { %vm390_vm4 = vcmp.eq.s32.totalorder %v316_v6, %v386_v32 }
  0xb1   : > { %vm392_vm5 = vmpackc.low %vm390_vm4, %vm390_vm4 }
  0xb2   : > { %v394_v36 = vsel %vm392_vm5, %v382_v34, 0 }
  0xb3   : > { %v396_v38 = vunpack.c.l.bf16 %v394_v36 }
  0xb5   : > { %398 = vadd.xlane.f32.xlu0 %v396_v38 }
  0xb7   : > { %v389_v33 = vpop.permute.xlu2 %388 }
  0xb8   : > { %vm391_vm6 = vcmp.eq.s32.totalorder %v316_v6, %v389_v33 }
  0xb9   : > { %vm393_vm7 = vmpackc.low %vm391_vm6, %vm391_vm6 }
  0xba   : > { %v395_v37 = vsel %vm393_vm7, %v383_v35, 0 }
  0xbb   : > { %v397_v39 = vunpack.c.l.bf16 %v395_v37 }
  0xcd   : > { %v331_v20 = vpop.xlane.xlu0 %330 }
  0xce   : > { %v334_v21 = vpack.c.bf16 %v331_v20, %v331_v20 }
  0xd0   : > { %v336_v23 = vunpack.c.l.bf16 %v334_v21 }
  0xd2   : > { %v338_v24 = vmax.f32 %v326_v22, %v336_v23 }
  0xd4   : > { %v358_v25 = vsub.f32 %v326_v22, %v338_v24  ;;  %375 = vst.msk [vmem:[#allocation2] sm:$0xff] %vm372_vm3, %v338_v24  ;;  %342 = vperm.xlu1 %731, %v338_v24  }
  0xd5   : > { %v333_v26 = vpop.xlane.xlu0 %332 }
  0xd6   : > { %v335_v27 = vpack.c.bf16 %v333_v26, %v333_v26  ;;  %v360_v58 = vmul.f32 1.442695, %v358_v25 }
  0xd8   : > { %v337_v29 = vunpack.c.l.bf16 %v335_v27 }
  0xda   : > { %v339_v30 = vmax.f32 %v327_v28, %v337_v29 }
  0xdc   : > { %v359_v31 = vsub.f32 %v327_v28, %v339_v30  ;;  %376 = vst.msk [vmem:[#allocation2 + $0x8] sm:$0xff] %vm372_vm3, %v339_v30  ;;  %347 = vperm.xlu1 %731, %v339_v30  }
  0xde   : > { %v362_v59 = vmul.f32 1.442695, %v359_v31 }
 0x106   : > { %400 = vadd.xlane.f32.xlu1 %v397_v39 }
 0x128   : > { %v399_v49 = vpop.xlane.xlu0 %398 }
 0x129   : > { %v402_v51 = vpack.c.bf16 %v399_v49, %v399_v49 }
 0x12b   : > { %v406_v55 = vunpack.c.l.bf16 %v402_v51 }
 0x12d   : > { %v408_v57 = vadd.f32 %v406_v55, %v404_v53 }
 0x12f   : > { %410 = vst.msk [vmem:[#allocation4] sm:$0xff] %vm372_vm3, %v408_v57 }
 0x146   : > { %v343_v40 = vpop.permute.xlu1 %342 }
 0x147   : > { %v350_v41 = vsub.f32 %v328_v10, %v343_v40 }
 0x149   : > { %v352_v42 = vmul.f32 1.442695, %v350_v41 }
 0x14b   : > { %734 = vpow2.f32 %v352_v42 }
 0x14e   : > { %v348_v43 = vpop.permute.xlu1 %347 }
 0x14f   : > { %v351_v44 = vsub.f32 %v329_v13, %v348_v43 }
 0x151   : > { %v735_v45 = vpop.eup %734  ;;  %v354_v46 = vmul.f32 1.442695, %v351_v44 }
 0x152   : > { %366 = vadd.xlane.f32.xlu2 %v735_v45 }
 0x153   : > { %736 = vpow2.f32 %v354_v46 }
 0x154   : > { %738 = vpow2.f32 %v360_v58 }
 0x155   : > { %740 = vpow2.f32 %v362_v59 }
 0x159   : > { %v737_v47 = vpop.eup %736 }
 0x15a   : > { %368 = vadd.xlane.f32.xlu0 %v737_v47  ;;  %v739_v60 = vpop.eup %738 }
 0x15b   : > { %v364_v62 = vmul.f32 %v739_v60, %v356_v61  ;;  %v741_v1 = vpop.eup %740 }
 0x15c   : > { %v365_v3 = vmul.f32 %v741_v1, %v357_v2 }
 0x179   : > { %v401_v48 = vpop.xlane.xlu1 %400 }
 0x17a   : > { %v403_v50 = vpack.c.bf16 %v401_v48, %v401_v48 }
 0x17c   : > { %v407_v54 = vunpack.c.l.bf16 %v403_v50 }
 0x17e   : > { %v409_v56 = vadd.f32 %v407_v54, %v405_v52 }
 0x180   : > { %411 = vst.msk [vmem:[#allocation4 + $0x8] sm:$0xff] %vm372_vm3, %v409_v56 }
 0x1c5   : > { %v367_v63 = vpop.xlane.xlu2 %366 }
 0x1c6   : > { %v370_v0 = vadd.f32 %v367_v63, %v364_v62 }
 0x1c8   : > { %373 = vst.msk [vmem:[#allocation3] sm:$0xff] %vm372_vm3, %v370_v0 }
 0x1cc   : > { %415 = sbr.rel (%p602_p6) target bundleno = 487 (0x1e7), region = 84 }
 0x1cd   : > { %v369_v4 = vpop.xlane.xlu0 %368 }
 0x1ce   : > { %v371_v5 = vadd.f32 %v369_v4, %v365_v3 }
 0x1d0   : > { %374 = vst.msk [vmem:[#allocation3 + $0x8] sm:$0xff] %vm372_vm3, %v371_v5 }
 0x1d1   : > { %v422_v6 = vld [vmem:[#allocation3] sm:$0xff]  ;;  %v420_v9 = vld [vmem:[#allocation2] sm:$0xff]  ;;  %v421_v14 = vld [vmem:[#allocation2 + $0x8] sm:$0xff] }
 0x1d2   : > { %742 = vlog2.f32 %v422_v6  ;;  %v416_v10 = vld [vmem:[%s983_s25] sm:$0xff]  ;;  %v417_v16 = vld [vmem:[%s983_s25 + $0x8] sm:$0xff] }
 0x1d3   : > { %v430_v13 = vld [vmem:[#allocation4] sm:$0xff]  ;;  %vm418_vm8 = vcmp.ne.s32.totalorder %v416_v10, 4294967196  ;;  %v431_v18 = vld [vmem:[#allocation4 + $0x8] sm:$0xff]  ;;  %vm419_vm9 = vcmp.ne.s32.totalorder %v417_v16, 4294967196 }
 0x1d7   : > { %v423_v7 = vld [vmem:[#allocation3 + $0x8] sm:$0xff] }
 0x1d8   : > { %744 = vlog2.f32 %v423_v7  ;;  %v743_v8 = vpop.eup %742 }
 0x1d9   : > { %v425_v11 = vmul.f32 0.6931472, %v743_v8 }
 0x1db   : > { %v428_v15 = vadd.f32 %v425_v11, %v420_v9 }
 0x1dd   : > { %v432_v19 = vsub.f32 %v428_v15, %v430_v13 }
 0x1de   : > { %v745_v12 = vpop.eup %744 }
 0x1df   : > { %v427_v17 = vmul.f32 0.6931472, %v745_v12  ;;  %v434_v21 = vsel %vm418_vm8, %v432_v19, 0.0 }
 0x1e0   : > { %436 = vst.msk [vmem:[%s988_s29] sm:$0xff] %vm372_vm3, %v434_v21 }
 0x1e1   : > { %v429_v20 = vadd.f32 %v427_v17, %v421_v14 }
 0x1e3   : > { %v433_v22 = vsub.f32 %v429_v20, %v431_v18 }
 0x1e5   : > { %v435_v23 = vsel %vm419_vm9, %v433_v22, 0.0 }
 0x1e6   : > { %437 = vst.msk [vmem:[%s988_s29 + $0x8] sm:$0xff] %vm372_vm3, %v435_v23 }
 0x1e7 PF: > { %s12_s15 = sadd.s32 1, %s832_s15   ;;  %s1037_s9 = smov %s812_s10 }
 0x1e8   : > { %p9_p7 = scmp.ge.s32.totalorder %s12_s15, 8   ;;  %s1038_s10 = smov %s935_s22 }
 0x1e9   : > { %s1039_s11 = smov %s824_s13  ;;  %s1040_s12 = smov %s828_s14 }
 0x1ea   : > { %s1041_s13 = smov %s1044_s16  ;;  %s1042_s14 = smov %s1048_s17 }
 0x1eb   :  { %11 = sbr.rel (!%p9_p7) target bundleno = 4 (0x4), region = 152 }

</bundles_post_ra>
